<compile_context>
chip_gen: v5e
topology: v5e:2x2
jax: 0.10.0
libtpu: 0.0.40
codegen_flags: <defaults>
</compile_context>

<pallas_src>
import functools
import math

import jax
import jax.numpy as jnp
from jax import lax
from jax.experimental import pallas as pl
from jax.experimental.pallas import tpu as pltpu

GN_EPS = 1e-5   # torch.nn.GroupNorm default eps
WS_EPS = 1e-5   # weight-standardization eps


# --------------------------- parameter glue (plain JAX, once per call) ---------------------------

def _standardize_weight(w):
    """Weight standardization per output channel over (in_ch_per_group, kernel)."""
    mean = jnp.mean(w, axis=(1, 2), keepdims=True)
    var = jnp.var(w, axis=(1, 2), keepdims=True)
    return (w - mean) * lax.rsqrt(var + WS_EPS)


def _block_diag_expand(w, groups):
    """Grouped conv weight (C_out, c_per_g, K) -> dense block-diagonal (C_out, groups*c_per_g, K)."""
    c_out, cpg, _ = w.shape
    cout_g = c_out // groups
    c_in = groups * cpg
    o_grp = jnp.arange(c_out)[:, None] // cout_g
    c_grp = jnp.arange(c_in)[None, :] // cpg
    mask = (o_grp == c_grp).astype(w.dtype)                 # (C_out, C_in)
    return jnp.tile(w, (1, groups, 1)) * mask[:, :, None]


def _vmem_caps():
    """(tile-sizing budget, explicit scoped-VMEM limit) in bytes, generation-aware."""
    try:
        cap = int(pltpu.get_tpu_info().vmem_capacity_bytes)   # 128 MiB v5e/v6e, 64 MiB v7x
    except Exception:
        cap = 64 * 1024 * 1024                                # safe fallback (v7x-sized)
    cap = max(cap, 32 * 1024 * 1024)
    return cap // 2, min(int(cap * 0.85), 112 * 1024 * 1024)


def _pick_b_tile(n, l_out, *, c_x, c_out, x_bytes, out_bytes, budget):
    """Batch-tile size such that (a) Wb = b_tile*l_out is a multiple of 128 (unmasked
    stores, aligned DMA) even when n is padded up, (b) the working set fits a real VMEM
    budget (double-buffered in/out blocks + S/S^T one-hots + live f32 temporaries), and
    (c) the grid keeps >= 2 steps when the batch allows it (v7x dual-TC + pipelining)."""
    t_min = 128 // math.gcd(l_out, 128)

    def fits(t):
        cols = t * l_out
        per_col = (2 * c_x * x_bytes                 # double-buffered input block
                   + 2 * c_out * out_bytes           # double-buffered output block
                   + 16 * t                          # S + S^T one-hot matrices (f32)
                   + 4 * (3 * c_x + 8 * c_out))      # live f32 temporaries in the body
        return cols * per_col <= budget

    t = t_min
    if not fits(t):
        # TODO(synk): very large C*L needs the L-tiled variant (accumulate GN stats
        # across length tiles); fall back to the minimal 128-aligned tile here.
        return t
    while -(-n // t) > 2:
        t2 = t * 2
        if not fits(t2) or -(-n // t2) < 2:
            break
        t = t2
    return t


# ------------------------------------ fused Pallas kernel ----------------------------------------

def _make_kernel(*, ch_in, ch_out, groups, L, L_out, b_tile, prestacked, residual,
                 compute_dtype):
    Wb = b_tile * L_out
    inv_cnt = 1.0 / float((ch_out // groups) * L_out)

    def kernel(x_ref, w1_ref, w2_ref, p_ref, s_ref, st_ref, g_ref, gt_ref, o_ref):
        w1 = w1_ref[...]                              # (C_out, 3*C_in)  block-diagonal
        w2 = w2_ref[...]                              # (C_out, C_out)   block-diagonal
        p = p_ref[...]                                # (C_out, 8) packed per-channel params
        b1, ga1, be1 = p[:, 0:1], p[:, 1:2], p[:, 2:3]
        b2, ga2, be2 = p[:, 3:4], p[:, 4:5], p[:, 5:6]
        S = s_ref[...]                                # (Wb, b_tile)  column -> sample one-hot
        ST = st_ref[...]                              # (b_tile, Wb)
        G = g_ref[...]                                # (groups, C_out) channel -> group
        GT = gt_ref[...]                              # (C_out, groups)

        def group_norm(h, gamma, beta):
            # One-pass per-(sample, group) statistics.  Sum & sum-of-squares are merged
            # into a single MXU segment reduction; scale & shift are merged into a single
            # broadcast-back matmul (halves the GN pass count when 2*C_out fits one M-tile).
            hcat = jnp.concatenate([h, h * h], axis=0)                           # (2C, Wb)
            stats = jnp.dot(hcat, S, preferred_element_type=jnp.float32)         # (2C, B)
            g_sum = jnp.dot(G, stats[:ch_out], preferred_element_type=jnp.float32)
            g_sq = jnp.dot(G, stats[ch_out:], preferred_element_type=jnp.float32)
            mean = g_sum * inv_cnt
            # NOTE: E[x^2]-E[x]^2 in f32 with a clamp; switch to a shifted/two-pass
            # variance if cout_g*L_out grows large enough for cancellation to matter.
            var = jnp.maximum(g_sq * inv_cnt - mean * mean, 0.0)
            inv = lax.rsqrt(var + GN_EPS)                                        # (g, B)
            inv_c = jnp.dot(GT, inv, preferred_element_type=jnp.float32)         # (C, B)
            mean_c = jnp.dot(GT, mean, preferred_element_type=jnp.float32)       # (C, B)
            scale_cb = inv_c * gamma                                             # fold affine
            shift_cb = beta - mean_c * scale_cb
            ss = jnp.concatenate([scale_cb, shift_cb], axis=0)                   # (2C, B)
            bc = jnp.dot(ss, ST, preferred_element_type=jnp.float32)             # (2C, Wb)
            return h * bc[:ch_out] + bc[ch_out:]

        if prestacked:
            # stride > 1: the wrapper already gathered/stacked the three conv taps (k-major).
            X = x_ref[0]                               # (3*C_in, Wb) in compute dtype
            x_res = None
        else:
            # stride == 1: taps via XLU lane rotations of the aligned block (no halo, no
            # offset lane slices); per-sample boundaries zeroed with an iota mask (== pad=1).
            # Rolls/masks run on 32-bit layouts; cast once to the matmul dtype at the end.
            x32 = x_ref[0].astype(jnp.float32)         # (C_in, Wb)
            left = pltpu.roll(x32, 1, axis=1)          # value at position m-1
            right = pltpu.roll(x32, Wb - 1, axis=1)    # value at position m+1
            pos = lax.broadcasted_iota(jnp.int32, (ch_in, Wb), 1) % L
            zero = jnp.zeros_like(x32)
            left = jnp.where(pos == 0, zero, left)
            right = jnp.where(pos == L - 1, zero, right)
            X = jnp.concatenate([left, x32, right], axis=0).astype(compute_dtype)
            x_res = x32

        # conv1 (grouped, k=3, pad=1) as ONE dense block-diagonal MXU matmul
        h = jnp.dot(w1, X, preferred_element_type=jnp.float32) + b1
        h = group_norm(h, ga1, be1)
        h = jnp.maximum(h, 0.0)

        # conv2 (grouped, k=1) as ONE dense block-diagonal MXU matmul
        h2 = jnp.dot(w2, h.astype(compute_dtype), preferred_element_type=jnp.float32) + b2
        h2 = jnp.maximum(h2, 0.0)
        h2 = group_norm(h2, ga2, be2)

        if residual:
            h2 = h2 + x_res

        o_ref[0] = h2.astype(o_ref.dtype)

    return kernel


def conv_layer_forward(x, params, *, groups=4, stride=1, compute_dtype=jnp.bfloat16):
    """Fused ConvLayer forward.  x: (N, ch_in, L); params: raw (un-standardized) weights.

    compute_dtype: operand dtype of the two conv matmuls and of the activation blocks in
    HBM (bfloat16 default: v5e's MXU has no f32 path and it halves input DMA bytes);
    GroupNorm statistics, the affine fold, ReLU and accumulation always run in float32."""
    N, C_in, L = x.shape
    C_out, cin_g, ksz = params["w1"].shape
    assert ksz == 3 and cin_g * groups == C_in and C_out % groups == 0
    L_out = (L + 2 - 3) // stride + 1
    residual = (C_in == C_out) and (L_out == L)

    if residual and stride != 1:
        # TODO(synk): degenerate stride>1 case with preserved length (only L==1) — XLA path.
        return ref_forward(x, params, groups=groups, stride=stride)

    # ---- weights: standardize, expand grouped -> dense block-diagonal, k-major columns ----
    w1s = _standardize_weight(params["w1"]).astype(jnp.float32)        # (C_out, cin_g, 3)
    w2s = _standardize_weight(params["w2"]).astype(jnp.float32)        # (C_out, cout_g, 1)
    W1d = _block_diag_expand(w1s, groups)                              # (C_out, C_in, 3)
    W1d = jnp.transpose(W1d, (0, 2, 1)).reshape(C_out, 3 * C_in).astype(compute_dtype)
    W2d = _block_diag_expand(w2s, groups)[:, :, 0].astype(compute_dtype)

    # ---- six per-channel params packed into a single (C_out, 8) block ----
    zeros = jnp.zeros((C_out,), jnp.float32)
    P = jnp.stack([params["b1"], params["gn1_w"], params["gn1_b"],
                   params["b2"], params["gn2_w"], params["gn2_b"], zeros, zeros],
                  axis=1).astype(jnp.float32)

    # ---- tiling: batch-tiled, channel-major flat lane-dense layout, VMEM-budgeted ----
    prestacked = stride != 1
    C_x = 3 * C_in if prestacked else C_in
    budget, vmem_limit = _vmem_caps()
    b_tile = _pick_b_tile(N, L_out, c_x=C_x, c_out=C_out,
                          x_bytes=jnp.dtype(compute_dtype).itemsize,
                          out_bytes=x.dtype.itemsize, budget=budget)
    n_tiles = -(-N // b_tile)
    N_pad = n_tiles * b_tile
    Wb = b_tile * L_out

    # ---- hoisted one-hot matrices (constant index_map -> DMA'd once, VMEM-resident) ----
    col_to_sample = jnp.arange(Wb, dtype=jnp.int32) // L_out
    S = (col_to_sample[:, None] == jnp.arange(b_tile, dtype=jnp.int32)[None, :]
         ).astype(jnp.float32)                                         # (Wb, b_tile)
    ST = S.T                                                           # (b_tile, Wb)
    ch_to_group = jnp.arange(C_out, dtype=jnp.int32) // (C_out // groups)
    G = (jnp.arange(groups, dtype=jnp.int32)[:, None] == ch_to_group[None, :]
         ).astype(jnp.float32)                                         # (groups, C_out)
    GT = G.T                                                           # (C_out, groups)

    # ---- activations: batch-tiled, channel-major flat blocks in compute dtype ----
    xb = x if N_pad == N else jnp.pad(x, ((0, N_pad - N), (0, 0), (0, 0)))
    xb = xb.astype(compute_dtype)
    if prestacked:
        # stride > 1: gather the three strided conv taps here (XLA) so the kernel never
        # does strided lane access; stack them k-major along the channel axis.
        xp = jnp.pad(xb, ((0, 0), (0, 0), (1, 1)))
        span = (L_out - 1) * stride + 1
        taps = [xp[:, :, kk:kk + span:stride] for kk in range(3)]      # (N_pad, C_in, L_out)
        xs = jnp.concatenate(taps, axis=1)                             # (N_pad, 3*C_in, L_out)
        x3 = xs.reshape(n_tiles, b_tile, C_x, L_out)
        x3 = jnp.transpose(x3, (0, 2, 1, 3)).reshape(n_tiles, C_x, Wb)
    else:
        x3 = xb.reshape(n_tiles, b_tile, C_in, L)
        x3 = jnp.transpose(x3, (0, 2, 1, 3)).reshape(n_tiles, C_in, Wb)

    kernel = _make_kernel(ch_in=C_in, ch_out=C_out, groups=groups, L=L, L_out=L_out,
                          b_tile=b_tile, prestacked=prestacked, residual=residual,
                          compute_dtype=compute_dtype)

    const = lambda n: (0, 0)
    out3 = pl.pallas_call(
        kernel,
        out_shape=jax.ShapeDtypeStruct((n_tiles, C_out, Wb), x.dtype),
        grid=(n_tiles,),
        in_specs=[
            pl.BlockSpec((1, C_x, Wb), lambda n: (n, 0, 0)),           # activations
            pl.BlockSpec((C_out, 3 * C_in), const),                    # conv1 weight (block-diag)
            pl.BlockSpec((C_out, C_out), const),                       # conv2 weight (block-diag)
            pl.BlockSpec((C_out, 8), const),                           # packed per-channel params
            pl.BlockSpec((Wb, b_tile), const),                         # S  (column -> sample)
            pl.BlockSpec((b_tile, Wb), const),                         # S^T
            pl.BlockSpec((groups, C_out), const),                      # G  (channel -> group)
            pl.BlockSpec((C_out, groups), const),                      # G^T
        ],
        out_specs=pl.BlockSpec((1, C_out, Wb), lambda n: (n, 0, 0)),
        # batch-tile axis is embarrassingly parallel (megacore / v7x dual-TC friendly)
        compiler_params=pltpu.CompilerParams(
            dimension_semantics=("parallel",),
            vmem_limit_bytes=vmem_limit),
    )(x3, W1d, W2d, P, S, ST, G, GT)

    out = out3.reshape(n_tiles, C_out, b_tile, L_out)
    out = jnp.transpose(out, (0, 2, 1, 3)).reshape(N_pad, C_out, L_out)
    return out[:N]


# ------------------------------------ pure-JAX reference -----------------------------------------

def _group_norm_ref(x, groups, gamma, beta):
    N, C, L = x.shape
    xg = x.reshape(N, groups, (C // groups) * L)
    m = xg.mean(axis=2, keepdims=True)
    v = ((xg - m) ** 2).mean(axis=2, keepdims=True)
    xn = ((xg - m) / jnp.sqrt(v + GN_EPS)).reshape(N, C, L)
    return xn * gamma[None, :, None] + beta[None, :, None]


def ref_forward(x, params, *, groups=4, stride=1):
    w1s = _standardize_weight(params["w1"])
    w2s = _standardize_weight(params["w2"])
    dn = ("NCH", "OIH", "NCH")
    y = lax.conv_general_dilated(x, w1s, (stride,), ((1, 1),), dimension_numbers=dn,
                                 feature_group_count=groups,
                                 precision=lax.Precision.HIGHEST)
    y = y + params["b1"][None, :, None]
    y = _group_norm_ref(y, groups, params["gn1_w"], params["gn1_b"])
    y = jnp.maximum(y, 0.0)
    y = lax.conv_general_dilated(y, w2s, (1,), ((0, 0),), dimension_numbers=dn,
                                 feature_group_count=groups,
                                 precision=lax.Precision.HIGHEST)
    y = y + params["b2"][None, :, None]
    y = jnp.maximum(y, 0.0)
    y = _group_norm_ref(y, groups, params["gn2_w"], params["gn2_b"])
    if x.shape[1] == y.shape[1] and x.shape[2] == y.shape[2]:
        y = y + x
    return y


# ------------------------------------------- demo ------------------------------------------------

if __name__ == "__main__":
    def _run_case(key, *, n, ch_in, ch_out, length, groups, stride, compute_dtype,
                  max_tol, mean_tol):
        keys = jax.random.split(key, 9)
        params = {
            "w1": 0.3 * jax.random.normal(keys[0], (ch_out, ch_in // groups, 3), jnp.float32),
            "b1": 0.1 * jax.random.normal(keys[1], (ch_out,), jnp.float32),
            "gn1_w": 1.0 + 0.1 * jax.random.normal(keys[2], (ch_out,), jnp.float32),
            "gn1_b": 0.1 * jax.random.normal(keys[3], (ch_out,), jnp.float32),
            "w2": 0.3 * jax.random.normal(keys[4], (ch_out, ch_out // groups, 1), jnp.float32),
            "b2": 0.1 * jax.random.normal(keys[5], (ch_out,), jnp.float32),
            "gn2_w": 1.0 + 0.1 * jax.random.normal(keys[6], (ch_out,), jnp.float32),
            "gn2_b": 0.1 * jax.random.normal(keys[7], (ch_out,), jnp.float32),
        }
        x = jax.random.normal(keys[8], (n, ch_in, length), jnp.float32)
        fwd = jax.jit(functools.partial(conv_layer_forward, groups=groups, stride=stride,
                                        compute_dtype=compute_dtype))
        y = fwd(x, params)
        jax.block_until_ready(y)
        y_ref = ref_forward(x, params, groups=groups, stride=stride)
        assert y.shape == y_ref.shape, (y.shape, y_ref.shape)
        diff = jnp.abs(y.astype(jnp.float32) - y_ref)
        max_err = float(jnp.max(diff))
        mean_err = float(jnp.mean(diff))
        assert max_err < max_tol, (max_err, max_tol)
        assert mean_err < mean_tol, (mean_err, mean_tol)

    root = jax.random.PRNGKey(0)
    k_a, k_b, k_c = jax.random.split(root, 3)
    # residual path (ch_in == ch_out, stride=1), f32 conv operands: tight tolerance,
    # exercises the roll-based tap construction and batch padding (N=2 -> tile of 8).
    _run_case(k_a, n=2, ch_in=8, ch_out=8, length=16, groups=4, stride=1,
              compute_dtype=jnp.float32, max_tol=3e-3, mean_tol=1e-3)
    # strided / channel-expanding path with default bf16 conv operands: wrapper-stacked
    # taps, batch padding, 2-step parallel grid, lane width exactly 128.
    _run_case(k_b, n=10, ch_in=8, ch_out=16, length=32, groups=4, stride=2,
              compute_dtype=jnp.bfloat16, max_tol=0.2, mean_tol=0.03)
    # residual + roll-tap path with bf16 conv operands (2-step grid, b_tile=2).
    _run_case(k_c, n=4, ch_in=16, ch_out=16, length=64, groups=4, stride=1,
              compute_dtype=jnp.bfloat16, max_tol=0.2, mean_tol=0.03)
    print("KERNEL_OK")
</pallas_src>

<mosaic_0001>
module attributes {stable_mosaic.version = 11 : i64} {
  func.func @kernel(%arg0: i32, %arg1: memref<1x8x128xf32, #tpu.memory_space<vmem>>, %arg2: memref<8x24xf32, #tpu.memory_space<vmem>>, %arg3: memref<8x8xf32, #tpu.memory_space<vmem>>, %arg4: memref<8x8xf32, #tpu.memory_space<vmem>>, %arg5: memref<128x8xf32, #tpu.memory_space<vmem>>, %arg6: memref<8x128xf32, #tpu.memory_space<vmem>>, %arg7: memref<4x8xf32, #tpu.memory_space<vmem>>, %arg8: memref<8x4xf32, #tpu.memory_space<vmem>>, %arg9: memref<1x8x128xf32, #tpu.memory_space<vmem>>) attributes {dimension_semantics = [#tpu.dimension_semantics<parallel>], iteration_bounds = array<i64: 1>, scalar_prefetch = 0 : i64, scratch_operands = 0 : i64, tpu.core_type = #tpu.core_type<tc>, window_params = [{transform_indices = @transform_0, window_bounds = array<i64: 1, 8, 128>}, {pipeline_mode = #tpu.pipeline_mode<synchronous>, transform_indices = @transform_1, window_bounds = array<i64: 8, 24>}, {pipeline_mode = #tpu.pipeline_mode<synchronous>, transform_indices = @transform_2, window_bounds = array<i64: 8, 8>}, {pipeline_mode = #tpu.pipeline_mode<synchronous>, transform_indices = @transform_3, window_bounds = array<i64: 8, 8>}, {pipeline_mode = #tpu.pipeline_mode<synchronous>, transform_indices = @transform_4, window_bounds = array<i64: 128, 8>}, {pipeline_mode = #tpu.pipeline_mode<synchronous>, transform_indices = @transform_5, window_bounds = array<i64: 8, 128>}, {pipeline_mode = #tpu.pipeline_mode<synchronous>, transform_indices = @transform_6, window_bounds = array<i64: 4, 8>}, {pipeline_mode = #tpu.pipeline_mode<synchronous>, transform_indices = @transform_7, window_bounds = array<i64: 8, 4>}, {transform_indices = @transform_8, window_bounds = array<i64: 1, 8, 128>}]} {
    %c0 = arith.constant 0 : index
    %c0_0 = arith.constant 0 : index
    %0 = vector.load %arg2[%c0, %c0_0] : memref<8x24xf32, #tpu.memory_space<vmem>>, vector<8x24xf32>
    %c0_1 = arith.constant 0 : index
    %c0_2 = arith.constant 0 : index
    %1 = vector.load %arg3[%c0_1, %c0_2] : memref<8x8xf32, #tpu.memory_space<vmem>>, vector<8x8xf32>
    %c0_3 = arith.constant 0 : index
    %c0_4 = arith.constant 0 : index
    %2 = vector.load %arg4[%c0_3, %c0_4] : memref<8x8xf32, #tpu.memory_space<vmem>>, vector<8x8xf32>
    %3 = vector.extract_strided_slice %2 {offsets = [0, 0], sizes = [8, 1], strides = [1, 1]} : vector<8x8xf32> to vector<8x1xf32>
    %4 = vector.extract_strided_slice %2 {offsets = [0, 1], sizes = [8, 1], strides = [1, 1]} : vector<8x8xf32> to vector<8x1xf32>
    %5 = vector.extract_strided_slice %2 {offsets = [0, 2], sizes = [8, 1], strides = [1, 1]} : vector<8x8xf32> to vector<8x1xf32>
    %6 = vector.extract_strided_slice %2 {offsets = [0, 3], sizes = [8, 1], strides = [1, 1]} : vector<8x8xf32> to vector<8x1xf32>
    %7 = vector.extract_strided_slice %2 {offsets = [0, 4], sizes = [8, 1], strides = [1, 1]} : vector<8x8xf32> to vector<8x1xf32>
    %8 = vector.extract_strided_slice %2 {offsets = [0, 5], sizes = [8, 1], strides = [1, 1]} : vector<8x8xf32> to vector<8x1xf32>
    %c0_5 = arith.constant 0 : index
    %c0_6 = arith.constant 0 : index
    %9 = vector.load %arg5[%c0_5, %c0_6] : memref<128x8xf32, #tpu.memory_space<vmem>>, vector<128x8xf32>
    %c0_7 = arith.constant 0 : index
    %c0_8 = arith.constant 0 : index
    %10 = vector.load %arg6[%c0_7, %c0_8] : memref<8x128xf32, #tpu.memory_space<vmem>>, vector<8x128xf32>
    %c0_9 = arith.constant 0 : index
    %c0_10 = arith.constant 0 : index
    %11 = vector.load %arg7[%c0_9, %c0_10] : memref<4x8xf32, #tpu.memory_space<vmem>>, vector<4x8xf32>
    %c0_11 = arith.constant 0 : index
    %c0_12 = arith.constant 0 : index
    %12 = vector.load %arg8[%c0_11, %c0_12] : memref<8x4xf32, #tpu.memory_space<vmem>>, vector<8x4xf32>
    %c0_13 = arith.constant 0 : index
    %c0_14 = arith.constant 0 : index
    %c0_15 = arith.constant 0 : index
    %13 = vector.load %arg1[%c0_13, %c0_14, %c0_15] : memref<1x8x128xf32, #tpu.memory_space<vmem>>, vector<1x8x128xf32>
    %14 = vector.shape_cast %13 : vector<1x8x128xf32> to vector<8x128xf32>
    %c1_i32 = arith.constant 1 : i32
    %15 = tpu.dynamic_rotate %14 by %c1_i32 dim 1 : vector<8x128xf32>, i32 -> vector<8x128xf32>
    %c127_i32 = arith.constant 127 : i32
    %16 = tpu.dynamic_rotate %14 by %c127_i32 dim 1 : vector<8x128xf32>, i32 -> vector<8x128xf32>
    %17 = tpu.iota {dimensions = array<i32: 1>} : vector<8x128xi32>
    %c16_i32 = arith.constant 16 : i32
    %c0_i32 = arith.constant 0 : i32
    %18 = arith.cmpi eq, %c16_i32, %c0_i32 : i32
    %c1_i32_16 = arith.constant 1 : i32
    %19 = arith.select %18, %c1_i32_16, %c16_i32 : i32
    %20 = vector.broadcast %19 : i32 to vector<8x128xi32>
    %21 = arith.remsi %17, %20 : vector<8x128xi32>
    %c0_i32_17 = arith.constant 0 : i32
    %22 = vector.broadcast %c0_i32_17 : i32 to vector<8x128xi32>
    %23 = arith.cmpi ne, %21, %22 : vector<8x128xi32>
    %c0_i32_18 = arith.constant 0 : i32
    %24 = vector.broadcast %c0_i32_18 : i32 to vector<8x128xi32>
    %25 = arith.cmpi slt, %21, %24 : vector<8x128xi32>
    %c0_i32_19 = arith.constant 0 : i32
    %26 = arith.cmpi slt, %19, %c0_i32_19 : i32
    %27 = vector.broadcast %26 : i1 to vector<8x128xi1>
    %28 = vector.broadcast %27 : vector<8x128xi1> to vector<8x128xi1>
    %29 = arith.xori %25, %28 : vector<8x128xi1>
    %30 = arith.andi %29, %23 : vector<8x128xi1>
    %31 = vector.broadcast %19 : i32 to vector<8x128xi32>
    %32 = arith.addi %21, %31 : vector<8x128xi32>
    %33 = arith.select %30, %32, %21 : vector<8x128xi1>, vector<8x128xi32>
    %cst = arith.constant 0.000000e+00 : f32
    %34 = vector.broadcast %cst : f32 to vector<8x128xf32>
    %c0_i32_20 = arith.constant 0 : i32
    %35 = vector.broadcast %c0_i32_20 : i32 to vector<8x128xi32>
    %36 = arith.cmpi eq, %33, %35 : vector<8x128xi32>
    %37 = arith.select %36, %34, %15 : vector<8x128xi1>, vector<8x128xf32>
    %c15_i32 = arith.constant 15 : i32
    %38 = vector.broadcast %c15_i32 : i32 to vector<8x128xi32>
    %39 = arith.cmpi eq, %33, %38 : vector<8x128xi32>
    %40 = arith.select %39, %34, %16 : vector<8x128xi1>, vector<8x128xf32>
    %41 = tpu.concatenate %37, %14, %40 in 0 : vector<8x128xf32>, vector<8x128xf32>, vector<8x128xf32> -> vector<24x128xf32>
    %cst_21 = arith.constant dense<0.000000e+00> : vector<8x128xf32>
    %42 = tpu.matmul %0, %41, %cst_21 {dimension_numbers = #tpu.dot_dimension_numbers<[1], [0], [0], [1], [0, 0, 1, 1], [], []>} : vector<8x24xf32>, vector<24x128xf32>, vector<8x128xf32> -> vector<8x128xf32>
    %43 = vector.broadcast %3 : vector<8x1xf32> to vector<8x128xf32>
    %44 = arith.addf %42, %43 : vector<8x128xf32>
    %45 = arith.mulf %44, %44 : vector<8x128xf32>
    %46 = tpu.concatenate %44, %45 in 0 : vector<8x128xf32>, vector<8x128xf32> -> vector<16x128xf32>
    %cst_22 = arith.constant dense<0.000000e+00> : vector<16x8xf32>
    %47 = tpu.matmul %46, %9, %cst_22 {dimension_numbers = #tpu.dot_dimension_numbers<[1], [0], [0], [1], [0, 0, 1, 1], [], []>} : vector<16x128xf32>, vector<128x8xf32>, vector<16x8xf32> -> vector<16x8xf32>
    %48 = vector.extract_strided_slice %47 {offsets = [0, 0], sizes = [8, 8], strides = [1, 1]} : vector<16x8xf32> to vector<8x8xf32>
    %cst_23 = arith.constant dense<0.000000e+00> : vector<4x8xf32>
    %49 = tpu.matmul %11, %48, %cst_23 {dimension_numbers = #tpu.dot_dimension_numbers<[1], [0], [0], [1], [0, 0, 1, 1], [], []>} : vector<4x8xf32>, vector<8x8xf32>, vector<4x8xf32> -> vector<4x8xf32>
    %50 = vector.extract_strided_slice %47 {offsets = [8, 0], sizes = [8, 8], strides = [1, 1]} : vector<16x8xf32> to vector<8x8xf32>
    %cst_24 = arith.constant dense<0.000000e+00> : vector<4x8xf32>
    %51 = tpu.matmul %11, %50, %cst_24 {dimension_numbers = #tpu.dot_dimension_numbers<[1], [0], [0], [1], [0, 0, 1, 1], [], []>} : vector<4x8xf32>, vector<8x8xf32>, vector<4x8xf32> -> vector<4x8xf32>
    %cst_25 = arith.constant 3.125000e-02 : f32
    %52 = vector.broadcast %cst_25 : f32 to vector<4x8xf32>
    %53 = arith.mulf %49, %52 : vector<4x8xf32>
    %cst_26 = arith.constant 3.125000e-02 : f32
    %54 = vector.broadcast %cst_26 : f32 to vector<4x8xf32>
    %55 = arith.mulf %51, %54 : vector<4x8xf32>
    %56 = arith.mulf %53, %53 : vector<4x8xf32>
    %57 = arith.subf %55, %56 : vector<4x8xf32>
    %cst_27 = arith.constant 0.000000e+00 : f32
    %58 = vector.broadcast %cst_27 : f32 to vector<4x8xf32>
    %59 = arith.maximumf %57, %58 : vector<4x8xf32>
    %cst_28 = arith.constant 9.99999974E-6 : f32
    %60 = vector.broadcast %cst_28 : f32 to vector<4x8xf32>
    %61 = arith.addf %59, %60 : vector<4x8xf32>
    %62 = math.rsqrt %61 : vector<4x8xf32>
    %cst_29 = arith.constant dense<0.000000e+00> : vector<8x8xf32>
    %63 = tpu.matmul %12, %62, %cst_29 {dimension_numbers = #tpu.dot_dimension_numbers<[1], [0], [0], [1], [0, 0, 1, 1], [], []>} : vector<8x4xf32>, vector<4x8xf32>, vector<8x8xf32> -> vector<8x8xf32>
    %cst_30 = arith.constant dense<0.000000e+00> : vector<8x8xf32>
    %64 = tpu.matmul %12, %53, %cst_30 {dimension_numbers = #tpu.dot_dimension_numbers<[1], [0], [0], [1], [0, 0, 1, 1], [], []>} : vector<8x4xf32>, vector<4x8xf32>, vector<8x8xf32> -> vector<8x8xf32>
    %65 = vector.broadcast %4 : vector<8x1xf32> to vector<8x8xf32>
    %66 = arith.mulf %63, %65 : vector<8x8xf32>
    %67 = arith.mulf %64, %66 : vector<8x8xf32>
    %68 = vector.broadcast %5 : vector<8x1xf32> to vector<8x8xf32>
    %69 = arith.subf %68, %67 : vector<8x8xf32>
    %70 = tpu.concatenate %66, %69 in 0 : vector<8x8xf32>, vector<8x8xf32> -> vector<16x8xf32>
    %cst_31 = arith.constant dense<0.000000e+00> : vector<16x128xf32>
    %71 = tpu.matmul %70, %10, %cst_31 {dimension_numbers = #tpu.dot_dimension_numbers<[1], [0], [0], [1], [0, 0, 1, 1], [], []>} : vector<16x8xf32>, vector<8x128xf32>, vector<16x128xf32> -> vector<16x128xf32>
    %72 = vector.extract_strided_slice %71 {offsets = [0, 0], sizes = [8, 128], strides = [1, 1]} : vector<16x128xf32> to vector<8x128xf32>
    %73 = arith.mulf %44, %72 : vector<8x128xf32>
    %74 = vector.extract_strided_slice %71 {offsets = [8, 0], sizes = [8, 128], strides = [1, 1]} : vector<16x128xf32> to vector<8x128xf32>
    %75 = arith.addf %73, %74 : vector<8x128xf32>
    %cst_32 = arith.constant 0.000000e+00 : f32
    %76 = vector.broadcast %cst_32 : f32 to vector<8x128xf32>
    %77 = arith.maximumf %75, %76 : vector<8x128xf32>
    %cst_33 = arith.constant dense<0.000000e+00> : vector<8x128xf32>
    %78 = tpu.matmul %1, %77, %cst_33 {dimension_numbers = #tpu.dot_dimension_numbers<[1], [0], [0], [1], [0, 0, 1, 1], [], []>} : vector<8x8xf32>, vector<8x128xf32>, vector<8x128xf32> -> vector<8x128xf32>
    %79 = vector.broadcast %6 : vector<8x1xf32> to vector<8x128xf32>
    %80 = arith.addf %78, %79 : vector<8x128xf32>
    %cst_34 = arith.constant 0.000000e+00 : f32
    %81 = vector.broadcast %cst_34 : f32 to vector<8x128xf32>
    %82 = arith.maximumf %80, %81 : vector<8x128xf32>
    %83 = arith.mulf %82, %82 : vector<8x128xf32>
    %84 = tpu.concatenate %82, %83 in 0 : vector<8x128xf32>, vector<8x128xf32> -> vector<16x128xf32>
    %cst_35 = arith.constant dense<0.000000e+00> : vector<16x8xf32>
    %85 = tpu.matmul %84, %9, %cst_35 {dimension_numbers = #tpu.dot_dimension_numbers<[1], [0], [0], [1], [0, 0, 1, 1], [], []>} : vector<16x128xf32>, vector<128x8xf32>, vector<16x8xf32> -> vector<16x8xf32>
    %86 = vector.extract_strided_slice %85 {offsets = [0, 0], sizes = [8, 8], strides = [1, 1]} : vector<16x8xf32> to vector<8x8xf32>
    %cst_36 = arith.constant dense<0.000000e+00> : vector<4x8xf32>
    %87 = tpu.matmul %11, %86, %cst_36 {dimension_numbers = #tpu.dot_dimension_numbers<[1], [0], [0], [1], [0, 0, 1, 1], [], []>} : vector<4x8xf32>, vector<8x8xf32>, vector<4x8xf32> -> vector<4x8xf32>
    %88 = vector.extract_strided_slice %85 {offsets = [8, 0], sizes = [8, 8], strides = [1, 1]} : vector<16x8xf32> to vector<8x8xf32>
    %cst_37 = arith.constant dense<0.000000e+00> : vector<4x8xf32>
    %89 = tpu.matmul %11, %88, %cst_37 {dimension_numbers = #tpu.dot_dimension_numbers<[1], [0], [0], [1], [0, 0, 1, 1], [], []>} : vector<4x8xf32>, vector<8x8xf32>, vector<4x8xf32> -> vector<4x8xf32>
    %cst_38 = arith.constant 3.125000e-02 : f32
    %90 = vector.broadcast %cst_38 : f32 to vector<4x8xf32>
    %91 = arith.mulf %87, %90 : vector<4x8xf32>
    %cst_39 = arith.constant 3.125000e-02 : f32
    %92 = vector.broadcast %cst_39 : f32 to vector<4x8xf32>
    %93 = arith.mulf %89, %92 : vector<4x8xf32>
    %94 = arith.mulf %91, %91 : vector<4x8xf32>
    %95 = arith.subf %93, %94 : vector<4x8xf32>
    %cst_40 = arith.constant 0.000000e+00 : f32
    %96 = vector.broadcast %cst_40 : f32 to vector<4x8xf32>
    %97 = arith.maximumf %95, %96 : vector<4x8xf32>
    %cst_41 = arith.constant 9.99999974E-6 : f32
    %98 = vector.broadcast %cst_41 : f32 to vector<4x8xf32>
    %99 = arith.addf %97, %98 : vector<4x8xf32>
    %100 = math.rsqrt %99 : vector<4x8xf32>
    %cst_42 = arith.constant dense<0.000000e+00> : vector<8x8xf32>
    %101 = tpu.matmul %12, %100, %cst_42 {dimension_numbers = #tpu.dot_dimension_numbers<[1], [0], [0], [1], [0, 0, 1, 1], [], []>} : vector<8x4xf32>, vector<4x8xf32>, vector<8x8xf32> -> vector<8x8xf32>
    %cst_43 = arith.constant dense<0.000000e+00> : vector<8x8xf32>
    %102 = tpu.matmul %12, %91, %cst_43 {dimension_numbers = #tpu.dot_dimension_numbers<[1], [0], [0], [1], [0, 0, 1, 1], [], []>} : vector<8x4xf32>, vector<4x8xf32>, vector<8x8xf32> -> vector<8x8xf32>
    %103 = vector.broadcast %7 : vector<8x1xf32> to vector<8x8xf32>
    %104 = arith.mulf %101, %103 : vector<8x8xf32>
    %105 = arith.mulf %102, %104 : vector<8x8xf32>
    %106 = vector.broadcast %8 : vector<8x1xf32> to vector<8x8xf32>
    %107 = arith.subf %106, %105 : vector<8x8xf32>
    %108 = tpu.concatenate %104, %107 in 0 : vector<8x8xf32>, vector<8x8xf32> -> vector<16x8xf32>
    %cst_44 = arith.constant dense<0.000000e+00> : vector<16x128xf32>
    %109 = tpu.matmul %108, %10, %cst_44 {dimension_numbers = #tpu.dot_dimension_numbers<[1], [0], [0], [1], [0, 0, 1, 1], [], []>} : vector<16x8xf32>, vector<8x128xf32>, vector<16x128xf32> -> vector<16x128xf32>
    %110 = vector.extract_strided_slice %109 {offsets = [0, 0], sizes = [8, 128], strides = [1, 1]} : vector<16x128xf32> to vector<8x128xf32>
    %111 = arith.mulf %82, %110 : vector<8x128xf32>
    %112 = vector.extract_strided_slice %109 {offsets = [8, 0], sizes = [8, 128], strides = [1, 1]} : vector<16x128xf32> to vector<8x128xf32>
    %113 = arith.addf %111, %112 : vector<8x128xf32>
    %114 = arith.addf %113, %14 : vector<8x128xf32>
    %c0_45 = arith.constant 0 : index
    %c0_46 = arith.constant 0 : index
    %c0_47 = arith.constant 0 : index
    %115 = vector.load %arg9[%c0_45, %c0_46, %c0_47] : memref<1x8x128xf32, #tpu.memory_space<vmem>>, vector<1x8x128xf32>
    %116 = vector.shape_cast %115 : vector<1x8x128xf32> to vector<8x128xf32>
    %117 = vector.shape_cast %114 : vector<8x128xf32> to vector<1x8x128xf32>
    tpu.vector_store %arg9[%c0_45, %c0_46, %c0_47], %117 {strides = array<i32>} : memref<1x8x128xf32, #tpu.memory_space<vmem>>, vector<1x8x128xf32>,
    return
  }
  func.func @transform_0(%arg0: i32) -> (i32, i32, i32) {
    %c0_i32 = arith.constant 0 : i32
    %c0_i32_0 = arith.constant 0 : i32
    %c0_i32_1 = arith.constant 0 : i32
    return %arg0, %c0_i32, %c0_i32_0 : i32, i32, i32
  }
  func.func @transform_1(%arg0: i32) -> (i32, i32) {
    %c0_i32 = arith.constant 0 : i32
    %c0_i32_0 = arith.constant 0 : i32
    %c0_i32_1 = arith.constant 0 : i32
    return %c0_i32, %c0_i32_0 : i32, i32
  }
  func.func @transform_2(%arg0: i32) -> (i32, i32) {
    %c0_i32 = arith.constant 0 : i32
    %c0_i32_0 = arith.constant 0 : i32
    %c0_i32_1 = arith.constant 0 : i32
    return %c0_i32, %c0_i32_0 : i32, i32
  }
  func.func @transform_3(%arg0: i32) -> (i32, i32) {
    %c0_i32 = arith.constant 0 : i32
    %c0_i32_0 = arith.constant 0 : i32
    %c0_i32_1 = arith.constant 0 : i32
    return %c0_i32, %c0_i32_0 : i32, i32
  }
  func.func @transform_4(%arg0: i32) -> (i32, i32) {
    %c0_i32 = arith.constant 0 : i32
    %c0_i32_0 = arith.constant 0 : i32
    %c0_i32_1 = arith.constant 0 : i32
    return %c0_i32, %c0_i32_0 : i32, i32
  }
  func.func @transform_5(%arg0: i32) -> (i32, i32) {
    %c0_i32 = arith.constant 0 : i32
    %c0_i32_0 = arith.constant 0 : i32
    %c0_i32_1 = arith.constant 0 : i32
    return %c0_i32, %c0_i32_0 : i32, i32
  }
  func.func @transform_6(%arg0: i32) -> (i32, i32) {
    %c0_i32 = arith.constant 0 : i32
    %c0_i32_0 = arith.constant 0 : i32
    %c0_i32_1 = arith.constant 0 : i32
    return %c0_i32, %c0_i32_0 : i32, i32
  }
  func.func @transform_7(%arg0: i32) -> (i32, i32) {
    %c0_i32 = arith.constant 0 : i32
    %c0_i32_0 = arith.constant 0 : i32
    %c0_i32_1 = arith.constant 0 : i32
    return %c0_i32, %c0_i32_0 : i32, i32
  }
  func.func @transform_8(%arg0: i32) -> (i32, i32, i32) {
    %c0_i32 = arith.constant 0 : i32
    %c0_i32_0 = arith.constant 0 : i32
    %c0_i32_1 = arith.constant 0 : i32
    return %arg0, %c0_i32, %c0_i32_0 : i32, i32, i32
  }
}

</mosaic_0001>

<bundles_post_ra>
// kernel: conv_layer_forward.1
= control target key start
LH: loop header
LB: loop body
LE: loop exit
PB: predicated region body
PF: predicated region fallthrough
CT: control target
= control target key end

     0   :  { %s526_s29 = smov 127   ;;  %s527_s30 = smov 1   ;;  %v528_v4 = vmov 0   ;;  %v56_v8 = vlaneseq  ;;  %vm79_vm2 = vcmask 195584   ;;  %vm127_vm3 = vcmask 64512   ;;  %s768_s0 = inlined_call_operand.vmem [shape: f32[1,8,128], index: 0, kind: input, shape index: {}]   ;;  %s769_s3 = inlined_call_operand.vmem [shape: f32[8,8], index: 3, kind: input, shape index: {}]   ;;  %s770_s4 = inlined_call_operand.vmem [shape: f32[128,8], index: 4, kind: input, shape index: {}]   ;;  %s771_s1 = inlined_call_operand.vmem [shape: f32[8,24], index: 1, kind: input, shape index: {}]   ;;  %s772_s6 = inlined_call_operand.vmem [shape: f32[4,8], index: 6, kind: input, shape index: {}]   ;;  %s773_s7 = inlined_call_operand.vmem [shape: f32[8,4], index: 7, kind: input, shape index: {}]   ;;  %s774_s5 = inlined_call_operand.vmem [shape: f32[8,128], index: 5, kind: input, shape index: {}]   ;;  %s775_s2 = inlined_call_operand.vmem [shape: f32[8,8], index: 2, kind: input, shape index: {}]   ;;  %s776_s8 = inlined_call_operand.vmem [shape: f32[1,8,128], index: 8, kind: output, shape index: {}]  }
   0x1   :  { %v582_v0 = vld [vmem:[%s768_s0] sm:$0xff]  ;;  %v594_v2 = vld [vmem:[%s770_s4 + $0x78] sm:$0xff]  ;;  %v599_v3 = vld [vmem:[%s770_s4 + $0x70] sm:$0xff]  ;;  %515 = vset.pattern.permute.xlu1 %v528_v4  ;;  %vm191_vm4 = vcmask 1043456   ;;  %vm187_vm5 = vcmask 31744   ;;  %v529_v35 = vmov 1  }
   0x2   :  { %54 = vrot.lane.b32.xlu0 %v582_v0, %s526_s29  ;;  %v589_v1 = vld [vmem:[%s769_s3] sm:$0xff]  ;;  %104 = vmatpush.msra.mxu1 %v594_v2  ;;  %v606_v5 = vld [vmem:[%s770_s4 + $0x68] sm:$0xff]  ;;  %v618_v7 = vld [vmem:[%s770_s4 + $0x58] sm:$0xff]  ;;  %v57_v11 = vand.u32 127, %v56_v8  ;;  %v530_v36 = vmov 2   ;;  %v531_v58 = vmov 3  }
   0x3   :  { %76 = vperm.xlu1 %515, %v589_v1   ;;  %v612_v6 = vld [vmem:[%s770_s4 + $0x60] sm:$0xff]  ;;  %v624_v9 = vld [vmem:[%s770_s4 + $0x50] sm:$0xff]  ;;  %v630_v10 = vld [vmem:[%s770_s4 + $0x48] sm:$0xff]  ;;  %517 = vset.pattern.permute.xlu2 %v530_v36 }
   0x4   :  { %105 = vmatpush.msra.mxu1 %v599_v3  ;;  %v636_v12 = vld [vmem:[%s770_s4 + $0x40] sm:$0xff]  ;;  %v642_v13 = vld [vmem:[%s770_s4 + $0x38] sm:$0xff]  ;;  %v62_v14 = vand.u32 15, %v57_v11  ;;  %v648_v15 = vld [vmem:[%s770_s4 + $0x30] sm:$0xff]  ;;  %245 = vperm.xlu2 %517, %v589_v1   ;;  %v533_v11 = vmov 5  }
   0x5   :  { %v654_v16 = vld [vmem:[%s770_s4 + $0x28] sm:$0xff]  ;;  %v660_v17 = vld [vmem:[%s770_s4 + $0x20] sm:$0xff]  ;;  %v666_v19 = vld [vmem:[%s770_s4 + $0x18] sm:$0xff] }
   0x6   :  { %106 = vmatpush.msra.mxu1 %v606_v5  ;;  %vm505_vm0 = vcmp.ne.s32.totalorder %v62_v14, 15  ;;  %v672_v20 = vld [vmem:[%s770_s4 + $0x10] sm:$0xff]  ;;  %v679_v21 = vld [vmem:[%s770_s4 + $0x8] sm:$0xff]  ;;  %vm506_vm1 = vcmp.ne.s32.totalorder %v62_v14, 0  ;;  %v29_v22 = vld [vmem:[%s771_s1] sm:$0xff] }
   0x7   :  { %v689_v24 = vld [vmem:[%s770_s4] sm:$0xff] }
   0x8   :  { %107 = vmatpush.msra.mxu1 %v612_v6  ;;  %v700_v29 = vld [vmem:[%s772_s6] sm:$0xf] }
   0x9   :  { %v710_v34 = vld [vmem:[%s773_s7] sm:$0xff] }
   0xa   :  { %52 = vrot.lane.b32.xlu0 %v582_v0, %s527_s30  ;;  %108 = vmatpush.msra.mxu1 %v618_v7  ;;  %v738_v50 = vld [vmem:[%s774_s5] sm:$0xff] }
   0xb   :  { %516 = vset.pattern.permute.xlu1 %v529_v35 }
   0xc   :  { %109 = vmatpush.msra.mxu1 %v624_v9  ;;  %239 = vperm.xlu1 %516, %v589_v1  }
   0xd   :  { %518 = vset.pattern.permute.xlu2 %v531_v58 }
   0xe   :  { %110 = vmatpush.msra.mxu1 %v630_v10  ;;  %282 = vperm.xlu2 %518, %v589_v1  }
  0x10   :  { %111 = vmatpush.msra.mxu1 %v636_v12 }
  0x12   :  { %112 = vmatpush.msra.mxu1 %v642_v13 }
  0x14   :  { %113 = vmatpush.msra.mxu1 %v648_v15  ;;  %520 = vset.pattern.permute.xlu1 %v533_v11 }
  0x15   :  { %442 = vperm.xlu1 %520, %v589_v1  }
  0x16   :  { %114 = vmatpush.msra.mxu1 %v654_v16 }
  0x18   :  { %115 = vmatpush.msra.mxu1 %v660_v17 }
  0x1a   :  { %116 = vmatpush.msra.mxu1 %v666_v19 }
  0x1c   :  { %117 = vmatpush.msra.mxu1 %v672_v20 }
  0x1e   :  { %118 = vmatpush.msra.mxu1 %v679_v21 }
  0x20   :  { %119 = vmatpush.msra.mxu1 %v689_v24 }
  0x5e   :  { %v246_v56 = vpop.permute.xlu2 %245 }
  0x74   :  { %v55_v18 = vpop.permute.xlu0 %54 }
  0x75   :  { %484 = vmatpush.msk.msra.mxu0 %vm505_vm0, %v55_v18  ;;  %v77_v25 = vpop.permute.xlu1 %76 }
  0x77   :  { %97 = vmatpush.msra.mxu0 %v582_v0 }
  0x7c   :  { %v53_v23 = vpop.permute.xlu0 %52 }
  0x7d   :  { %486 = vmatpush.msk.msra.mxu0 %vm506_vm1, %v53_v23 }
  0x7e   :  { %487 = vmatmul.msk.f32.vlgmr.msra.gmra.mxu0 %vm79_vm2, %v29_v22  ;;  %v240_v51 = vpop.permute.xlu1 %239 }
  0xfb   :  { %v100_v26 = vpop.f32.mrf.mxu0 }
  0xfc   :  { %v692_v27 = vadd.f32 %v100_v26, %v77_v25 }
  0xfe   :  { %120 = vmatmul.f32.vlgmr.msra.gmra.mxu1 %v692_v27  ;;  %v103_v28 = vmul.f32 %v692_v27, %v692_v27 }
 0x106   :  { %123 = vmatmul.f32.gmra.mxu1 %v103_v28 }
 0x17b   :  { %v121_v30 = vpop.f32.mrf.mxu1 }
 0x17c   :  { %146 = vmatpush.msrb.mxu0 %v121_v30 }
 0x17d   :  { %488 = vmatmul.msk.f32.vlgmr.msrb.gmra.mxu0 %vm127_vm3, %v700_v29 }
 0x17e   :  { %270 = vmatpush.msra.mxu0 %v738_v50 }
 0x183   :  { %v124_v31 = vpop.f32.mrf.mxu1 }
 0x184   :  { %166 = vmatpush.msrb.mxu1 %v124_v31  ;;  %v443_v31 = vpop.permute.xlu1 %442 }
 0x185   :  { %489 = vmatmul.msk.f32.vlgmr.msrb.gmra.mxu1 %vm127_vm3, %v700_v29 }
 0x1fa   :  { %v148_v32 = vpop.f32.mrf.mxu0 }
 0x1fb   :  { %v171_v33 = vmul.f32 0.03125, %v148_v32 }
 0x1fd   :  { %492 = vmatpush.msk.msra.mxu3 %vm191_vm4, %v171_v33  ;;  %v173_v37 = vmul.f32 %v171_v33, %v171_v33 }
 0x1fe   :  { %493 = vmatmul.msk.f32.vlgmr.msra.gmra.mxu3 %vm187_vm5, %v710_v34 }
 0x1ff   :  { %310 = vmatpush.msrb.mxu3 %v594_v2  ;;  %v30_v2 = vld [vmem:[%s775_s2] sm:$0xff] }
 0x201   :  { %311 = vmatpush.msrb.mxu3 %v599_v3  ;;  %v283_v3 = vpop.permute.xlu2 %282 }
 0x202   :  { %v168_v38 = vpop.f32.mrf.mxu1 }
 0x203   :  { %v172_v39 = vmul.f32 0.03125, %v168_v38  ;;  %312 = vmatpush.msrb.mxu3 %v606_v5 }
 0x205   :  { %v174_v40 = vsub.f32 %v172_v39, %v173_v37  ;;  %313 = vmatpush.msrb.mxu3 %v612_v6 }
 0x207   :  { %v175_v41 = vmax.f32 %v174_v40, 0.0  ;;  %314 = vmatpush.msrb.mxu3 %v618_v7 }
 0x209   :  { %v176_v42 = vadd.f32 1e-05, %v175_v41  ;;  %315 = vmatpush.msrb.mxu3 %v624_v9 }
 0x20b   :  { %522 = vrsqrt.f32 %v176_v42  ;;  %316 = vmatpush.msrb.mxu3 %v630_v10  ;;  %vm183_vm7 = vweird.f32 %v176_v42  ;;  %v532_v10 = vmov 4  }
 0x20c   :  { %519 = vset.pattern.permute.xlu0 %v532_v10 }
 0x20d   :  { %317 = vmatpush.msrb.mxu3 %v636_v12  ;;  %436 = vperm.xlu0 %519, %v589_v1  }
 0x20f   :  { %318 = vmatpush.msrb.mxu3 %v642_v13 }
 0x211   :  { %v523_v43 = vpop.eup %522  ;;  %319 = vmatpush.msrb.mxu3 %v648_v15 }
 0x212   :  { %v178_v44 = vmul.f32 %v523_v43, %v176_v42  ;;  %vm184_vm6 = vweird.f32 %v523_v43 }
 0x213   :  { %320 = vmatpush.msrb.mxu3 %v654_v16  ;;  %vm185_vm8 = vmor %vm183_vm7, %vm184_vm6 }
 0x214   :  { %v179_v45 = vmul.f32 %v523_v43, %v178_v44 }
 0x215   :  { %321 = vmatpush.msrb.mxu3 %v660_v17  ;;  %521 = vset.pattern.permute.xlu0 %v533_v11 }
 0x216   :  { %v180_v46 = vmul.f32 0.5, %v179_v45 }
 0x217   :  { %322 = vmatpush.msrb.mxu3 %v666_v19 }
 0x218   :  { %v181_v47 = vsub.f32 1.5, %v180_v46 }
 0x219   :  { %323 = vmatpush.msrb.mxu3 %v672_v20 }
 0x21a   :  { %v182_v48 = vmul.f32 %v523_v43, %v181_v47 }
 0x21b   :  { %324 = vmatpush.msrb.mxu3 %v679_v21 }
 0x21c   :  { %v186_v49 = vsel %vm185_vm8, %v523_v43, %v182_v48 }
 0x21d   :  { %490 = vmatpush.msk.msra.mxu2 %vm191_vm4, %v186_v49  ;;  %325 = vmatpush.msrb.mxu3 %v689_v24 }
 0x21e   :  { %491 = vmatmul.msk.f32.vlgmr.msra.gmra.mxu2 %vm187_vm5, %v710_v34 }
 0x27f   :  { %v437_v26 = vpop.permute.xlu0 %436 }
 0x281   :  { %v235_v54 = vpop.f32.mrf.mxu3 }
 0x2a1   :  { %v212_v52 = vpop.f32.mrf.mxu2 }
 0x2a2   :  { %v242_v53 = vmul.f32 %v240_v51, %v212_v52 }
 0x2a4   :  { %494 = vmatmul.msk.f32.vlgmr.msra.gmra.mxu0 %vm127_vm3, %v242_v53  ;;  %v243_v55 = vmul.f32 %v242_v53, %v235_v54 }
 0x2a6   :  { %v248_v57 = vsub.f32 %v246_v56, %v243_v55 }
 0x2ac   :  { %495 = vmatmul.msk.f32.gmra.mxu0 %vm127_vm3, %v248_v57 }
 0x321   :  { %v272_v59 = vpop.f32.mrf.mxu0 }
 0x322   :  { %v278_v60 = vmul.f32 %v272_v59, %v692_v27 }
 0x329   :  { %v275_v61 = vpop.f32.mrf.mxu0 }
 0x32a   :  { %v279_v62 = vadd.f32 %v278_v60, %v275_v61 }
 0x32c   :  { %v280_v63 = vmax.f32 %v279_v62, 0.0 }
 0x32e   :  { %303 = vmatpush.msrb.mxu2 %v280_v63 }
 0x32f   :  { %496 = vmatmul.msk.f32.vlgmr.msrb.gmra.mxu2 %vm127_vm3, %v30_v2 }
 0x3b2   :  { %v305_v4 = vpop.f32.mrf.mxu2 }
 0x3b3   :  { %v306_v5 = vadd.f32 %v305_v4, %v283_v3 }
 0x3b5   :  { %v308_v6 = vmax.f32 %v306_v5, 0.0 }
 0x3b7   :  { %326 = vmatmul.f32.vlgmr.msrb.gmra.mxu3 %v308_v6  ;;  %v309_v7 = vmul.f32 %v308_v6, %v308_v6 }
 0x3bf   :  { %329 = vmatmul.f32.gmra.mxu3 %v309_v7 }
 0x43a   :  { %v327_v8 = vpop.f32.mrf.mxu3 }
 0x43b   :  { %348 = vmatpush.msra.mxu2 %v327_v8 }
 0x43c   :  { %497 = vmatmul.msk.f32.vlgmr.msra.gmra.mxu2 %vm127_vm3, %v700_v29 }
 0x442   :  { %v330_v9 = vpop.f32.mrf.mxu3 }
 0x443   :  { %368 = vmatpush.msrb.mxu0 %v330_v9 }
 0x444   :  { %498 = vmatmul.msk.f32.vlgmr.msrb.gmra.mxu0 %vm127_vm3, %v700_v29 }
 0x4bf   :  { %v350_v12 = vpop.f32.mrf.mxu2 }
 0x4c0   :  { %v373_v13 = vmul.f32 0.03125, %v350_v12 }
 0x4c1   :  { %v370_v14 = vpop.f32.mrf.mxu0 }
 0x4c2   :  { %v375_v15 = vmul.f32 %v373_v13, %v373_v13  ;;  %v374_v16 = vmul.f32 0.03125, %v370_v14  ;;  %501 = vmatpush.msk.msra.mxu0 %vm191_vm4, %v373_v13 }
 0x4c3   :  { %502 = vmatmul.msk.f32.vlgmr.msra.gmra.mxu0 %vm187_vm5, %v710_v34 }
 0x4c4   :  { %v376_v17 = vsub.f32 %v374_v16, %v375_v15 }
 0x4c6   :  { %v377_v18 = vmax.f32 %v376_v17, 0.0 }
 0x4c8   :  { %v378_v19 = vadd.f32 1e-05, %v377_v18 }
 0x4ca   :  { %524 = vrsqrt.f32 %v378_v19  ;;  %vm385_vm10 = vweird.f32 %v378_v19 }
 0x4d0   :  { %v525_v20 = vpop.eup %524 }
 0x4d1   :  { %v380_v21 = vmul.f32 %v525_v20, %v378_v19  ;;  %vm386_vm9 = vweird.f32 %v525_v20 }
 0x4d2   :  { %vm387_vm11 = vmor %vm385_vm10, %vm386_vm9 }
 0x4d3   :  { %v381_v22 = vmul.f32 %v525_v20, %v380_v21 }
 0x4d5   :  { %v382_v23 = vmul.f32 0.5, %v381_v22 }
 0x4d7   :  { %v383_v24 = vsub.f32 1.5, %v382_v23 }
 0x4d9   :  { %v384_v1 = vmul.f32 %v525_v20, %v383_v24 }
 0x4db   :  { %v388_v25 = vsel %vm387_vm11, %v525_v20, %v384_v1 }
 0x4dc   :  { %499 = vmatpush.msk.msrb.mxu2 %vm191_vm4, %v388_v25 }
 0x4dd   :  { %500 = vmatmul.msk.f32.vlgmr.msrb.gmra.mxu2 %vm187_vm5, %v710_v34 }
 0x4de   :  { %467 = vmatpush.msra.mxu2 %v738_v50 }
 0x540   :  { %v432_v29 = vpop.f32.mrf.mxu0 }
 0x560   :  { %v409_v27 = vpop.f32.mrf.mxu2 }
 0x561   :  { %v439_v28 = vmul.f32 %v437_v26, %v409_v27 }
 0x563   :  { %503 = vmatmul.msk.f32.vlgmr.msra.gmra.mxu2 %vm127_vm3, %v439_v28  ;;  %v440_v30 = vmul.f32 %v439_v28, %v432_v29 }
 0x565   :  { %v445_v32 = vsub.f32 %v443_v31, %v440_v30 }
 0x56b   :  { %504 = vmatmul.msk.f32.gmra.mxu2 %vm127_vm3, %v445_v32 }
 0x5e6   :  { %v469_v33 = vpop.f32.mrf.mxu2 }
 0x5e7   :  { %v475_v35 = vmul.f32 %v469_v33, %v308_v6 }
 0x5ee   :  { %v472_v36 = vpop.f32.mrf.mxu2 }
 0x5ef   :  { %v476_v37 = vadd.f32 %v475_v35, %v472_v36 }
 0x5f1   :  { %v477_v38 = vadd.f32 %v476_v37, %v582_v0 }
 0x5f3   :  { %478 = vst [vmem:[%s776_s8] sm:$0xff] %v477_v38 }

</bundles_post_ra>
